<compile_context>
chip_gen: v5e
topology: v5e:2x2
jax: 0.10.0
libtpu: 0.0.40
codegen_flags: <defaults>
</compile_context>

<pallas_src>
import functools

import jax
import jax.numpy as jnp
from jax.experimental import pallas as pl
from jax.experimental.pallas import tpu as pltpu


LANE = 128
VMEM_LIMIT = 32 * 1024 * 1024


def _round_up(x, m):
    return ((x + m - 1) // m) * m


# ---------------------------------------------------------------------------
# Kernels
# ---------------------------------------------------------------------------

def gcn_layer_kernel(a_ref, h_ref, w_ref, b_ref, out_ref, acc_ref, *, apply_relu):
    """One GCN layer: out = act((A @ H) @ W + b), tiled over A's rows and cols."""
    k = pl.program_id(1)

    @pl.when(k == 0)
    def _():
        acc_ref[...] = jnp.zeros_like(acc_ref)

    # Aggregation: bf16 x bf16 MXU matmul, f32 accumulation.
    acc_ref[...] += jnp.dot(a_ref[...], h_ref[...],
                            preferred_element_type=jnp.float32)

    @pl.when(k == pl.num_programs(1) - 1)
    def _():
        h = jnp.dot(acc_ref[...], w_ref[...],
                    preferred_element_type=jnp.float32) + b_ref[...]
        if apply_relu:
            h = jnp.maximum(h, 0.0)
        out_ref[...] = h.astype(out_ref.dtype)


def pool_fc_kernel(p_ref, h_ref, wfc_ref, bfc_ref, out_ref, acc_ref):
    """global_mean_pool (as P @ H) fused with the final Linear layer."""
    k = pl.program_id(0)

    @pl.when(k == 0)
    def _():
        acc_ref[...] = jnp.zeros_like(acc_ref)

    acc_ref[...] += jnp.dot(p_ref[...], h_ref[...],
                            preferred_element_type=jnp.float32)

    @pl.when(k == pl.num_programs(0) - 1)
    def _():
        out_ref[...] = jnp.dot(acc_ref[...], wfc_ref[...],
                               preferred_element_type=jnp.float32) + bfc_ref[...]


# ---------------------------------------------------------------------------
# pallas_call wrappers
# ---------------------------------------------------------------------------

def gcn_layer(a_bf16, h_bf16, w, b, *, apply_relu, tm, tk):
    np_, _ = a_bf16.shape
    fin = h_bf16.shape[1]
    fout = w.shape[1]
    grid = (np_ // tm, np_ // tk)

    flops = 2 * np_ * np_ * fin + 2 * np_ * fin * fout
    bytes_accessed = (a_bf16.size * 2 + h_bf16.size * 2 * grid[0]
                      + w.size * 4 + b.size * 4 + np_ * fout * 2)

    return pl.pallas_call(
        functools.partial(gcn_layer_kernel, apply_relu=apply_relu),
        out_shape=jax.ShapeDtypeStruct((np_, fout), jnp.bfloat16),
        grid_spec=pltpu.PrefetchScalarGridSpec(
            num_scalar_prefetch=0,
            grid=grid,
            in_specs=[
                pl.BlockSpec((tm, tk), lambda i, k: (i, k)),      # A tile
                pl.BlockSpec((tk, fin), lambda i, k: (k, 0)),     # H rows for this k
                pl.BlockSpec((fin, fout), lambda i, k: (0, 0)),   # W (resident)
                pl.BlockSpec((1, fout), lambda i, k: (0, 0)),     # bias
            ],
            out_specs=pl.BlockSpec((tm, fout), lambda i, k: (i, 0)),
            scratch_shapes=[pltpu.VMEM((tm, fin), jnp.float32)],
        ),
        compiler_params=pltpu.CompilerParams(
            dimension_semantics=("parallel", "arbitrary"),
            vmem_limit_bytes=VMEM_LIMIT,
        ),
        cost_estimate=pl.CostEstimate(
            flops=int(flops), transcendentals=0, bytes_accessed=int(bytes_accessed)),
    )(a_bf16, h_bf16, w, b)


def pool_fc(p_bf16, h_bf16, wfc, bfc, *, tk):
    gp, np_ = p_bf16.shape
    hid = h_bf16.shape[1]
    cp = wfc.shape[1]
    grid = (np_ // tk,)

    flops = 2 * gp * np_ * hid + 2 * gp * hid * cp
    bytes_accessed = p_bf16.size * 2 + h_bf16.size * 2 + wfc.size * 4 + gp * cp * 4

    return pl.pallas_call(
        pool_fc_kernel,
        out_shape=jax.ShapeDtypeStruct((gp, cp), jnp.float32),
        grid_spec=pltpu.PrefetchScalarGridSpec(
            num_scalar_prefetch=0,
            grid=grid,
            in_specs=[
                pl.BlockSpec((gp, tk), lambda k: (0, k)),     # pool matrix columns
                pl.BlockSpec((tk, hid), lambda k: (k, 0)),    # H rows for this k
                pl.BlockSpec((hid, cp), lambda k: (0, 0)),    # fc weight
                pl.BlockSpec((1, cp), lambda k: (0, 0)),      # fc bias
            ],
            out_specs=pl.BlockSpec((gp, cp), lambda k: (0, 0)),
            scratch_shapes=[pltpu.VMEM((gp, hid), jnp.float32)],
        ),
        compiler_params=pltpu.CompilerParams(
            dimension_semantics=("arbitrary",),
            vmem_limit_bytes=VMEM_LIMIT,
        ),
        cost_estimate=pl.CostEstimate(
            flops=int(flops), transcendentals=0, bytes_accessed=int(bytes_accessed)),
    )(p_bf16, h_bf16, wfc, bfc)


@jax.jit
def gnn_forward(a_norm, x, params, pool_mat):
    """Full GNN forward: 3x GCNConv (+ReLU on 1/2) -> mean pool -> Linear."""
    n, f = x.shape
    g = pool_mat.shape[0]
    hid = params["w1"].shape[1]
    c = params["wfc"].shape[1]

    # Lane-dense padded sizes.
    np_ = _round_up(max(n, LANE), LANE)
    fp = _round_up(f, LANE)
    hp = _round_up(hid, LANE)
    cp = _round_up(c, LANE)
    gp = _round_up(max(g, 8), 8)

    # Tile sizes for the A tiling: 256 when the padded node count supports it
    # (fills more of the v6e/v7x 256x256 MXU), 128 otherwise (v5e-friendly).
    tm = tk = 256 if (np_ % 256 == 0 and np_ >= 512) else 128

    # bf16 MXU operands, zero padded (padded rows/cols never reach real outputs).
    a_p = jnp.zeros((np_, np_), jnp.bfloat16).at[:n, :n].set(a_norm.astype(jnp.bfloat16))
    x_p = jnp.zeros((np_, fp), jnp.bfloat16).at[:n, :f].set(x.astype(jnp.bfloat16))
    p_p = jnp.zeros((gp, np_), jnp.bfloat16).at[:g, :n].set(pool_mat.astype(jnp.bfloat16))

    def pad2(w, r, co):
        return jnp.zeros((r, co), jnp.float32).at[:w.shape[0], :w.shape[1]].set(w)

    w1, b1 = pad2(params["w1"], fp, hp), pad2(params["b1"], 1, hp)
    w2, b2 = pad2(params["w2"], hp, hp), pad2(params["b2"], 1, hp)
    w3, b3 = pad2(params["w3"], hp, hp), pad2(params["b3"], 1, hp)
    wfc, bfc = pad2(params["wfc"], hp, cp), pad2(params["bfc"], 1, cp)

    h1 = gcn_layer(a_p, x_p, w1, b1, apply_relu=True, tm=tm, tk=tk)   # aggregate-first (width 8)
    h2 = gcn_layer(a_p, h1, w2, b2, apply_relu=True, tm=tm, tk=tk)
    h3 = gcn_layer(a_p, h2, w3, b3, apply_relu=False, tm=tm, tk=tk)
    logits = pool_fc(p_p, h3, wfc, bfc, tk=tk)                        # [gp, cp], lane dense
    return logits[:g, :c]


# ---------------------------------------------------------------------------
# Graph -> dense glue (plain JAX)
# ---------------------------------------------------------------------------

def build_norm_adj(edge_index, num_nodes):
    """Dense D^-1/2 (A + I_remaining) D^-1/2, matching torch_geometric gcn_norm:
    duplicate edges scatter-add, self-loops only added where missing."""
    src, dst = edge_index
    adj = jnp.zeros((num_nodes, num_nodes), jnp.float32)
    adj = adj.at[src, dst].add(1.0)
    diag = jnp.diag(adj)
    adj = adj + jnp.diag(jnp.where(diag == 0, 1.0, 0.0))
    deg = jnp.sum(adj, axis=1)
    dinv = jnp.where(deg > 0, 1.0 / jnp.sqrt(deg), 0.0)
    return adj * dinv[:, None] * dinv[None, :]


def build_pool_matrix(batch, num_graphs, num_nodes):
    """P[g, n] = 1/|nodes in graph g| if batch[n] == g else 0 (global_mean_pool)."""
    onehot = (batch[None, :] == jnp.arange(num_graphs)[:, None]).astype(jnp.float32)
    counts = jnp.maximum(jnp.sum(onehot, axis=1, keepdims=True), 1.0)
    return onehot / counts


def init_params(key, input_dim, hidden, num_classes):
    ks = jax.random.split(key, 8)

    def glorot(k, fan_in, fan_out):
        lim = jnp.sqrt(6.0 / (fan_in + fan_out))
        return jax.random.uniform(k, (fan_in, fan_out), jnp.float32, -lim, lim)

    return {
        "w1": glorot(ks[0], input_dim, hidden),
        "b1": jnp.zeros((1, hidden), jnp.float32),
        "w2": glorot(ks[1], hidden, hidden),
        "b2": jnp.zeros((1, hidden), jnp.float32),
        "w3": glorot(ks[2], hidden, hidden),
        "b3": jnp.zeros((1, hidden), jnp.float32),
        "wfc": glorot(ks[3], hidden, num_classes),
        "bfc": jax.random.uniform(ks[4], (1, num_classes), jnp.float32,
                                  -1.0 / jnp.sqrt(hidden), 1.0 / jnp.sqrt(hidden)),
    }


if __name__ == "__main__":
    key = jax.random.PRNGKey(0)
    k_x, k_e, k_p = jax.random.split(key, 3)

    N = 32            # nodes across the batch
    INPUT_DIM = 8     # node feature dim (ENZYMES-style small)
    HIDDEN = 64
    NUM_CLASSES = 6
    G = 2             # graphs in the batch
    E = 64            # directed edges

    x = jax.random.normal(k_x, (N, INPUT_DIM), jnp.float32)

    # random undirected edges (both directions, as in ENZYMES edge_index)
    e_src = jax.random.randint(k_e, (E,), 0, N)
    e_dst = jax.random.randint(jax.random.fold_in(k_e, 1), (E,), 0, N)
    edge_index = jnp.stack([jnp.concatenate([e_src, e_dst]),
                            jnp.concatenate([e_dst, e_src])], axis=0)

    # batch assignment: first half of nodes -> graph 0, second half -> graph 1
    batch = jnp.concatenate([jnp.zeros(N // 2, jnp.int32),
                             jnp.ones(N - N // 2, jnp.int32)])

    a_norm = build_norm_adj(edge_index, N)
    pool_mat = build_pool_matrix(batch, G, N)
    params = init_params(k_p, INPUT_DIM, HIDDEN, NUM_CLASSES)

    out = gnn_forward(a_norm, x, params, pool_mat)
    jax.block_until_ready(out)

    # plain-JAX f32 reference to sanity-check kernel semantics
    def ref(a, xx, p):
        h = jnp.maximum(a @ (xx @ params["w1"]) + params["b1"], 0.0)
        h = jnp.maximum(a @ (h @ params["w2"]) + params["b2"], 0.0)
        h = a @ (h @ params["w3"]) + params["b3"]
        return (p @ h) @ params["wfc"] + params["bfc"]

    expected = ref(a_norm, x, pool_mat)
    assert out.shape == (G, NUM_CLASSES)
    # bf16 MXU operands (A / H / P) with f32 accumulation -> relaxed tolerance.
    assert jnp.allclose(out, expected, atol=5e-2, rtol=5e-2), \
        float(jnp.max(jnp.abs(out - expected)))

    print("KERNEL_OK")
</pallas_src>

<mosaic_0001>
module attributes {stable_mosaic.version = 11 : i64} {
  func.func @gcn_layer_kernel(%arg0: i32, %arg1: i32, %arg2: memref<128x128xbf16, #tpu.memory_space<vmem>>, %arg3: memref<128x128xbf16, #tpu.memory_space<vmem>>, %arg4: memref<128x128xf32, #tpu.memory_space<vmem>>, %arg5: memref<1x128xf32, #tpu.memory_space<vmem>>, %arg6: memref<128x128xbf16, #tpu.memory_space<vmem>>, %arg7: memref<128x128xf32, #tpu.memory_space<vmem>>) attributes {dimension_semantics = [#tpu.dimension_semantics<parallel>, #tpu.dimension_semantics<arbitrary>], iteration_bounds = array<i64: 1, 1>, scalar_prefetch = 0 : i64, scratch_operands = 1 : i64, tpu.core_type = #tpu.core_type<tc>, window_params = [{transform_indices = @transform_0, window_bounds = array<i64: 128, 128>}, {transform_indices = @transform_1, window_bounds = array<i64: 128, 128>}, {pipeline_mode = #tpu.pipeline_mode<synchronous>, transform_indices = @transform_2, window_bounds = array<i64: 128, 128>}, {pipeline_mode = #tpu.pipeline_mode<synchronous>, transform_indices = @transform_3, window_bounds = array<i64: 1, 128>}, {transform_indices = @transform_4, window_bounds = array<i64: 128, 128>}]} {
    %c0_i32 = arith.constant 0 : i32
    %0 = arith.cmpi eq, %arg1, %c0_i32 : i32
    %1 = arith.extui %0 : i1 to i32
    %c0_i32_0 = arith.constant 0 : i32
    %2 = arith.cmpi ne, %1, %c0_i32_0 : i32
    scf.if %2 {
      %cst_10 = arith.constant 0.000000e+00 : f32
      %12 = vector.broadcast %cst_10 : f32 to vector<128x128xf32>
      %c0_11 = arith.constant 0 : index
      %c0_12 = arith.constant 0 : index
      %13 = vector.load %arg7[%c0_11, %c0_12] : memref<128x128xf32, #tpu.memory_space<vmem>>, vector<128x128xf32>
      tpu.vector_store %arg7[%c0_11, %c0_12], %12 {strides = array<i32>} : memref<128x128xf32, #tpu.memory_space<vmem>>, vector<128x128xf32>,
    } else {
    }
    %c0 = arith.constant 0 : index
    %c0_1 = arith.constant 0 : index
    %3 = vector.load %arg7[%c0, %c0_1] : memref<128x128xf32, #tpu.memory_space<vmem>>, vector<128x128xf32>
    %c0_2 = arith.constant 0 : index
    %c0_3 = arith.constant 0 : index
    %4 = vector.load %arg2[%c0_2, %c0_3] : memref<128x128xbf16, #tpu.memory_space<vmem>>, vector<128x128xbf16>
    %c0_4 = arith.constant 0 : index
    %c0_5 = arith.constant 0 : index
    %5 = vector.load %arg3[%c0_4, %c0_5] : memref<128x128xbf16, #tpu.memory_space<vmem>>, vector<128x128xbf16>
    %cst = arith.constant dense<0.000000e+00> : vector<128x128xf32>
    %6 = tpu.matmul %4, %5, %cst {dimension_numbers = #tpu.dot_dimension_numbers<[1], [0], [0], [1], [0, 0, 1, 1], [], []>} : vector<128x128xbf16>, vector<128x128xbf16>, vector<128x128xf32> -> vector<128x128xf32>
    %7 = arith.addf %3, %6 : vector<128x128xf32>
    %c0_6 = arith.constant 0 : index
    %c0_7 = arith.constant 0 : index
    %8 = vector.load %arg7[%c0_6, %c0_7] : memref<128x128xf32, #tpu.memory_space<vmem>>, vector<128x128xf32>
    tpu.vector_store %arg7[%c0_6, %c0_7], %7 {strides = array<i32>} : memref<128x128xf32, #tpu.memory_space<vmem>>, vector<128x128xf32>,
    %c0_i32_8 = arith.constant 0 : i32
    %9 = arith.cmpi eq, %arg1, %c0_i32_8 : i32
    %10 = arith.extui %9 : i1 to i32
    %c0_i32_9 = arith.constant 0 : i32
    %11 = arith.cmpi ne, %10, %c0_i32_9 : i32
    scf.if %11 {
      %c0_10 = arith.constant 0 : index
      %c0_11 = arith.constant 0 : index
      %12 = vector.load %arg7[%c0_10, %c0_11] : memref<128x128xf32, #tpu.memory_space<vmem>>, vector<128x128xf32>
      %c0_12 = arith.constant 0 : index
      %c0_13 = arith.constant 0 : index
      %13 = vector.load %arg4[%c0_12, %c0_13] : memref<128x128xf32, #tpu.memory_space<vmem>>, vector<128x128xf32>
      %cst_14 = arith.constant dense<0.000000e+00> : vector<128x128xf32>
      %14 = tpu.matmul %12, %13, %cst_14 {dimension_numbers = #tpu.dot_dimension_numbers<[1], [0], [0], [1], [0, 0, 1, 1], [], []>} : vector<128x128xf32>, vector<128x128xf32>, vector<128x128xf32> -> vector<128x128xf32>
      %c0_15 = arith.constant 0 : index
      %c0_16 = arith.constant 0 : index
      %15 = vector.load %arg5[%c0_15, %c0_16] : memref<1x128xf32, #tpu.memory_space<vmem>>, vector<1x128xf32>
      %16 = vector.broadcast %15 : vector<1x128xf32> to vector<128x128xf32>
      %17 = arith.addf %14, %16 : vector<128x128xf32>
      %18 = arith.truncf %17 : vector<128x128xf32> to vector<128x128xbf16>
      %c0_17 = arith.constant 0 : index
      %c0_18 = arith.constant 0 : index
      %19 = vector.load %arg6[%c0_17, %c0_18] : memref<128x128xbf16, #tpu.memory_space<vmem>>, vector<128x128xbf16>
      tpu.vector_store %arg6[%c0_17, %c0_18], %18 {strides = array<i32>} : memref<128x128xbf16, #tpu.memory_space<vmem>>, vector<128x128xbf16>,
    } else {
    }
    return
  }
  func.func @transform_0(%arg0: i32, %arg1: i32) -> (i32, i32) {
    %c0_i32 = arith.constant 0 : i32
    return %arg0, %arg1 : i32, i32
  }
  func.func @transform_1(%arg0: i32, %arg1: i32) -> (i32, i32) {
    %c0_i32 = arith.constant 0 : i32
    %c0_i32_0 = arith.constant 0 : i32
    return %arg1, %c0_i32 : i32, i32
  }
  func.func @transform_2(%arg0: i32, %arg1: i32) -> (i32, i32) {
    %c0_i32 = arith.constant 0 : i32
    %c0_i32_0 = arith.constant 0 : i32
    %c0_i32_1 = arith.constant 0 : i32
    return %c0_i32, %c0_i32_0 : i32, i32
  }
  func.func @transform_3(%arg0: i32, %arg1: i32) -> (i32, i32) {
    %c0_i32 = arith.constant 0 : i32
    %c0_i32_0 = arith.constant 0 : i32
    %c0_i32_1 = arith.constant 0 : i32
    return %c0_i32, %c0_i32_0 : i32, i32
  }
  func.func @transform_4(%arg0: i32, %arg1: i32) -> (i32, i32) {
    %c0_i32 = arith.constant 0 : i32
    %c0_i32_0 = arith.constant 0 : i32
    return %arg0, %c0_i32 : i32, i32
  }
}

module attributes {stable_mosaic.version = 11 : i64} {
  func.func @gcn_layer_kernel(%arg0: i32, %arg1: i32, %arg2: memref<128x128xbf16, #tpu.memory_space<vmem>>, %arg3: memref<128x128xbf16, #tpu.memory_space<vmem>>, %arg4: memref<128x128xf32, #tpu.memory_space<vmem>>, %arg5: memref<1x128xf32, #tpu.memory_space<vmem>>, %arg6: memref<128x128xbf16, #tpu.memory_space<vmem>>, %arg7: memref<128x128xf32, #tpu.memory_space<vmem>>) attributes {dimension_semantics = [#tpu.dimension_semantics<parallel>, #tpu.dimension_semantics<arbitrary>], iteration_bounds = array<i64: 1, 1>, scalar_prefetch = 0 : i64, scratch_operands = 1 : i64, tpu.core_type = #tpu.core_type<tc>, window_params = [{transform_indices = @transform_0, window_bounds = array<i64: 128, 128>}, {transform_indices = @transform_1, window_bounds = array<i64: 128, 128>}, {pipeline_mode = #tpu.pipeline_mode<synchronous>, transform_indices = @transform_2, window_bounds = array<i64: 128, 128>}, {pipeline_mode = #tpu.pipeline_mode<synchronous>, transform_indices = @transform_3, window_bounds = array<i64: 1, 128>}, {transform_indices = @transform_4, window_bounds = array<i64: 128, 128>}]} {
    %c0_i32 = arith.constant 0 : i32
    %0 = arith.cmpi eq, %arg1, %c0_i32 : i32
    %1 = arith.extui %0 : i1 to i32
    %c0_i32_0 = arith.constant 0 : i32
    %2 = arith.cmpi ne, %1, %c0_i32_0 : i32
    scf.if %2 {
      %cst_10 = arith.constant 0.000000e+00 : f32
      %12 = vector.broadcast %cst_10 : f32 to vector<128x128xf32>
      %c0_11 = arith.constant 0 : index
      %c0_12 = arith.constant 0 : index
      %13 = vector.load %arg7[%c0_11, %c0_12] : memref<128x128xf32, #tpu.memory_space<vmem>>, vector<128x128xf32>
      tpu.vector_store %arg7[%c0_11, %c0_12], %12 {strides = array<i32>} : memref<128x128xf32, #tpu.memory_space<vmem>>, vector<128x128xf32>,
    } else {
    }
    %c0 = arith.constant 0 : index
    %c0_1 = arith.constant 0 : index
    %3 = vector.load %arg7[%c0, %c0_1] : memref<128x128xf32, #tpu.memory_space<vmem>>, vector<128x128xf32>
    %c0_2 = arith.constant 0 : index
    %c0_3 = arith.constant 0 : index
    %4 = vector.load %arg2[%c0_2, %c0_3] : memref<128x128xbf16, #tpu.memory_space<vmem>>, vector<128x128xbf16>
    %c0_4 = arith.constant 0 : index
    %c0_5 = arith.constant 0 : index
    %5 = vector.load %arg3[%c0_4, %c0_5] : memref<128x128xbf16, #tpu.memory_space<vmem>>, vector<128x128xbf16>
    %cst = arith.constant dense<0.000000e+00> : vector<128x128xf32>
    %6 = tpu.matmul %4, %5, %cst {dimension_numbers = #tpu.dot_dimension_numbers<[1], [0], [0], [1], [0, 0, 1, 1], [], []>} : vector<128x128xbf16>, vector<128x128xbf16>, vector<128x128xf32> -> vector<128x128xf32>
    %7 = arith.addf %3, %6 : vector<128x128xf32>
    %c0_6 = arith.constant 0 : index
    %c0_7 = arith.constant 0 : index
    %8 = vector.load %arg7[%c0_6, %c0_7] : memref<128x128xf32, #tpu.memory_space<vmem>>, vector<128x128xf32>
    tpu.vector_store %arg7[%c0_6, %c0_7], %7 {strides = array<i32>} : memref<128x128xf32, #tpu.memory_space<vmem>>, vector<128x128xf32>,
    %c0_i32_8 = arith.constant 0 : i32
    %9 = arith.cmpi eq, %arg1, %c0_i32_8 : i32
    %10 = arith.extui %9 : i1 to i32
    %c0_i32_9 = arith.constant 0 : i32
    %11 = arith.cmpi ne, %10, %c0_i32_9 : i32
    scf.if %11 {
      %c0_10 = arith.constant 0 : index
      %c0_11 = arith.constant 0 : index
      %12 = vector.load %arg7[%c0_10, %c0_11] : memref<128x128xf32, #tpu.memory_space<vmem>>, vector<128x128xf32>
      %c0_12 = arith.constant 0 : index
      %c0_13 = arith.constant 0 : index
      %13 = vector.load %arg4[%c0_12, %c0_13] : memref<128x128xf32, #tpu.memory_space<vmem>>, vector<128x128xf32>
      %cst_14 = arith.constant dense<0.000000e+00> : vector<128x128xf32>
      %14 = tpu.matmul %12, %13, %cst_14 {dimension_numbers = #tpu.dot_dimension_numbers<[1], [0], [0], [1], [0, 0, 1, 1], [], []>} : vector<128x128xf32>, vector<128x128xf32>, vector<128x128xf32> -> vector<128x128xf32>
      %c0_15 = arith.constant 0 : index
      %c0_16 = arith.constant 0 : index
      %15 = vector.load %arg5[%c0_15, %c0_16] : memref<1x128xf32, #tpu.memory_space<vmem>>, vector<1x128xf32>
      %16 = vector.broadcast %15 : vector<1x128xf32> to vector<128x128xf32>
      %17 = arith.addf %14, %16 : vector<128x128xf32>
      %cst_17 = arith.constant 0.000000e+00 : f32
      %18 = vector.broadcast %cst_17 : f32 to vector<128x128xf32>
      %19 = arith.maximumf %17, %18 : vector<128x128xf32>
      %20 = arith.truncf %19 : vector<128x128xf32> to vector<128x128xbf16>
      %c0_18 = arith.constant 0 : index
      %c0_19 = arith.constant 0 : index
      %21 = vector.load %arg6[%c0_18, %c0_19] : memref<128x128xbf16, #tpu.memory_space<vmem>>, vector<128x128xbf16>
      tpu.vector_store %arg6[%c0_18, %c0_19], %20 {strides = array<i32>} : memref<128x128xbf16, #tpu.memory_space<vmem>>, vector<128x128xbf16>,
    } else {
    }
    return
  }
  func.func @transform_0(%arg0: i32, %arg1: i32) -> (i32, i32) {
    %c0_i32 = arith.constant 0 : i32
    return %arg0, %arg1 : i32, i32
  }
  func.func @transform_1(%arg0: i32, %arg1: i32) -> (i32, i32) {
    %c0_i32 = arith.constant 0 : i32
    %c0_i32_0 = arith.constant 0 : i32
    return %arg1, %c0_i32 : i32, i32
  }
  func.func @transform_2(%arg0: i32, %arg1: i32) -> (i32, i32) {
    %c0_i32 = arith.constant 0 : i32
    %c0_i32_0 = arith.constant 0 : i32
    %c0_i32_1 = arith.constant 0 : i32
    return %c0_i32, %c0_i32_0 : i32, i32
  }
  func.func @transform_3(%arg0: i32, %arg1: i32) -> (i32, i32) {
    %c0_i32 = arith.constant 0 : i32
    %c0_i32_0 = arith.constant 0 : i32
    %c0_i32_1 = arith.constant 0 : i32
    return %c0_i32, %c0_i32_0 : i32, i32
  }
  func.func @transform_4(%arg0: i32, %arg1: i32) -> (i32, i32) {
    %c0_i32 = arith.constant 0 : i32
    %c0_i32_0 = arith.constant 0 : i32
    return %arg0, %c0_i32 : i32, i32
  }
}

module attributes {stable_mosaic.version = 11 : i64} {
  func.func @pool_fc_kernel(%arg0: i32, %arg1: memref<8x128xbf16, #tpu.memory_space<vmem>>, %arg2: memref<128x128xbf16, #tpu.memory_space<vmem>>, %arg3: memref<128x128xf32, #tpu.memory_space<vmem>>, %arg4: memref<1x128xf32, #tpu.memory_space<vmem>>, %arg5: memref<8x128xf32, #tpu.memory_space<vmem>>, %arg6: memref<8x128xf32, #tpu.memory_space<vmem>>) attributes {dimension_semantics = [#tpu.dimension_semantics<arbitrary>], iteration_bounds = array<i64: 1>, scalar_prefetch = 0 : i64, scratch_operands = 1 : i64, tpu.core_type = #tpu.core_type<tc>, window_params = [{transform_indices = @transform_0, window_bounds = array<i64: 8, 128>}, {transform_indices = @transform_1, window_bounds = array<i64: 128, 128>}, {pipeline_mode = #tpu.pipeline_mode<synchronous>, transform_indices = @transform_2, window_bounds = array<i64: 128, 128>}, {pipeline_mode = #tpu.pipeline_mode<synchronous>, transform_indices = @transform_3, window_bounds = array<i64: 1, 128>}, {pipeline_mode = #tpu.pipeline_mode<synchronous>, transform_indices = @transform_4, window_bounds = array<i64: 8, 128>}]} {
    %c0_i32 = arith.constant 0 : i32
    %0 = arith.cmpi eq, %arg0, %c0_i32 : i32
    %1 = arith.extui %0 : i1 to i32
    %c0_i32_0 = arith.constant 0 : i32
    %2 = arith.cmpi ne, %1, %c0_i32_0 : i32
    scf.if %2 {
      %cst_10 = arith.constant 0.000000e+00 : f32
      %12 = vector.broadcast %cst_10 : f32 to vector<8x128xf32>
      %c0_11 = arith.constant 0 : index
      %c0_12 = arith.constant 0 : index
      %13 = vector.load %arg6[%c0_11, %c0_12] : memref<8x128xf32, #tpu.memory_space<vmem>>, vector<8x128xf32>
      tpu.vector_store %arg6[%c0_11, %c0_12], %12 {strides = array<i32>} : memref<8x128xf32, #tpu.memory_space<vmem>>, vector<8x128xf32>,
    } else {
    }
    %c0 = arith.constant 0 : index
    %c0_1 = arith.constant 0 : index
    %3 = vector.load %arg6[%c0, %c0_1] : memref<8x128xf32, #tpu.memory_space<vmem>>, vector<8x128xf32>
    %c0_2 = arith.constant 0 : index
    %c0_3 = arith.constant 0 : index
    %4 = vector.load %arg1[%c0_2, %c0_3] : memref<8x128xbf16, #tpu.memory_space<vmem>>, vector<8x128xbf16>
    %c0_4 = arith.constant 0 : index
    %c0_5 = arith.constant 0 : index
    %5 = vector.load %arg2[%c0_4, %c0_5] : memref<128x128xbf16, #tpu.memory_space<vmem>>, vector<128x128xbf16>
    %cst = arith.constant dense<0.000000e+00> : vector<8x128xf32>
    %6 = tpu.matmul %4, %5, %cst {dimension_numbers = #tpu.dot_dimension_numbers<[1], [0], [0], [1], [0, 0, 1, 1], [], []>} : vector<8x128xbf16>, vector<128x128xbf16>, vector<8x128xf32> -> vector<8x128xf32>
    %7 = arith.addf %3, %6 : vector<8x128xf32>
    %c0_6 = arith.constant 0 : index
    %c0_7 = arith.constant 0 : index
    %8 = vector.load %arg6[%c0_6, %c0_7] : memref<8x128xf32, #tpu.memory_space<vmem>>, vector<8x128xf32>
    tpu.vector_store %arg6[%c0_6, %c0_7], %7 {strides = array<i32>} : memref<8x128xf32, #tpu.memory_space<vmem>>, vector<8x128xf32>,
    %c0_i32_8 = arith.constant 0 : i32
    %9 = arith.cmpi eq, %arg0, %c0_i32_8 : i32
    %10 = arith.extui %9 : i1 to i32
    %c0_i32_9 = arith.constant 0 : i32
    %11 = arith.cmpi ne, %10, %c0_i32_9 : i32
    scf.if %11 {
      %c0_10 = arith.constant 0 : index
      %c0_11 = arith.constant 0 : index
      %12 = vector.load %arg6[%c0_10, %c0_11] : memref<8x128xf32, #tpu.memory_space<vmem>>, vector<8x128xf32>
      %c0_12 = arith.constant 0 : index
      %c0_13 = arith.constant 0 : index
      %13 = vector.load %arg3[%c0_12, %c0_13] : memref<128x128xf32, #tpu.memory_space<vmem>>, vector<128x128xf32>
      %cst_14 = arith.constant dense<0.000000e+00> : vector<8x128xf32>
      %14 = tpu.matmul %12, %13, %cst_14 {dimension_numbers = #tpu.dot_dimension_numbers<[1], [0], [0], [1], [0, 0, 1, 1], [], []>} : vector<8x128xf32>, vector<128x128xf32>, vector<8x128xf32> -> vector<8x128xf32>
      %c0_15 = arith.constant 0 : index
      %c0_16 = arith.constant 0 : index
      %15 = vector.load %arg4[%c0_15, %c0_16] : memref<1x128xf32, #tpu.memory_space<vmem>>, vector<1x128xf32>
      %16 = vector.broadcast %15 : vector<1x128xf32> to vector<8x128xf32>
      %17 = arith.addf %14, %16 : vector<8x128xf32>
      %c0_17 = arith.constant 0 : index
      %c0_18 = arith.constant 0 : index
      %18 = vector.load %arg5[%c0_17, %c0_18] : memref<8x128xf32, #tpu.memory_space<vmem>>, vector<8x128xf32>
      tpu.vector_store %arg5[%c0_17, %c0_18], %17 {strides = array<i32>} : memref<8x128xf32, #tpu.memory_space<vmem>>, vector<8x128xf32>,
    } else {
    }
    return
  }
  func.func @transform_0(%arg0: i32) -> (i32, i32) {
    %c0_i32 = arith.constant 0 : i32
    %c0_i32_0 = arith.constant 0 : i32
    return %c0_i32, %arg0 : i32, i32
  }
  func.func @transform_1(%arg0: i32) -> (i32, i32) {
    %c0_i32 = arith.constant 0 : i32
    %c0_i32_0 = arith.constant 0 : i32
    return %arg0, %c0_i32 : i32, i32
  }
  func.func @transform_2(%arg0: i32) -> (i32, i32) {
    %c0_i32 = arith.constant 0 : i32
    %c0_i32_0 = arith.constant 0 : i32
    %c0_i32_1 = arith.constant 0 : i32
    return %c0_i32, %c0_i32_0 : i32, i32
  }
  func.func @transform_3(%arg0: i32) -> (i32, i32) {
    %c0_i32 = arith.constant 0 : i32
    %c0_i32_0 = arith.constant 0 : i32
    %c0_i32_1 = arith.constant 0 : i32
    return %c0_i32, %c0_i32_0 : i32, i32
  }
  func.func @transform_4(%arg0: i32) -> (i32, i32) {
    %c0_i32 = arith.constant 0 : i32
    %c0_i32_0 = arith.constant 0 : i32
    %c0_i32_1 = arith.constant 0 : i32
    return %c0_i32, %c0_i32_0 : i32, i32
  }
}

</mosaic_0001>

<bundles_post_ra>
// kernel: gnn_forward.6
= control target key start
LH: loop header
LB: loop body
LE: loop exit
PB: predicated region body
PF: predicated region fallthrough
CT: control target
= control target key end

     0   :  { %s702_s1 = inlined_call_operand.vmem [shape: bf16[128,128], index: 1, kind: input, shape index: {}]   ;;  %s703_s0 = inlined_call_operand.vmem [shape: bf16[128,128], index: 0, kind: input, shape index: {}]   ;;  %s704_s2 = inlined_call_operand.vmem [shape: f32[128,128], index: 2, kind: input, shape index: {}]   ;;  %s705_s3 = inlined_call_operand.vmem [shape: f32[1,128], index: 3, kind: input, shape index: {}]   ;;  %s706_s4 = inlined_call_operand.vmem [shape: bf16[128,128], index: 4, kind: output, shape index: {}]  }
   0x1   :  { %v481_v0 = vld [vmem:[%s702_s1 + $0x38] sm:$0xff]  ;;  %v480_v1 = vld [vmem:[%s702_s1 + $0x30] sm:$0xff]  ;;  %v479_v2 = vld [vmem:[%s702_s1 + $0x28] sm:$0xff] }
   0x2   :  { %529 = vmatpush.bf16.msra.mxu2 %v481_v0  ;;  %181 = vmatpush.bf16.msra.mxu0 %v481_v0  ;;  %v478_v3 = vld [vmem:[%s702_s1 + $0x20] sm:$0xff]  ;;  %v477_v4 = vld [vmem:[%s702_s1 + $0x18] sm:$0xff]  ;;  %v476_v5 = vld [vmem:[%s702_s1 + $0x10] sm:$0xff] }
   0x3   :  { %v475_v6 = vld [vmem:[%s702_s1 + $0x8] sm:$0xff]  ;;  %v474_v7 = vld [vmem:[%s702_s1] sm:$0xff]  ;;  %v296_v12 = vld [vmem:[%s704_s2 + $0x78] sm:$0xff] }
   0x4   :  { %v470_v8 = vld [vmem:[%s703_s0 + $0x20] sm:$0xff]  ;;  %v471_v10 = vld [vmem:[%s703_s0 + $0x28] sm:$0xff]  ;;  %v295_v13 = vld [vmem:[%s704_s2 + $0x70] sm:$0xff]  ;;  %301 = vmatpush.msra.mxu1 %v296_v12  ;;  %537 = vmatpush.msra.mxu3 %v296_v12 }
   0x5   :  { %v466_v9 = vld [vmem:[%s703_s0] sm:$0xff]  ;;  %v467_v11 = vld [vmem:[%s703_s0 + $0x8] sm:$0xff]  ;;  %v292_v16 = vld [vmem:[%s704_s2 + $0x58] sm:$0xff] }
   0x6   :  { %530 = vmatpush.bf16.msra.mxu2 %v480_v1  ;;  %182 = vmatpush.bf16.msra.mxu0 %v480_v1  ;;  %v294_v14 = vld [vmem:[%s704_s2 + $0x68] sm:$0xff]  ;;  %v293_v15 = vld [vmem:[%s704_s2 + $0x60] sm:$0xff]  ;;  %v291_v17 = vld [vmem:[%s704_s2 + $0x50] sm:$0xff] }
   0x7   :  { %302 = vmatpush.msra.mxu1 %v295_v13  ;;  %538 = vmatpush.msra.mxu3 %v295_v13  ;;  %v290_v18 = vld [vmem:[%s704_s2 + $0x48] sm:$0xff]  ;;  %v472_v19 = vld [vmem:[%s703_s0 + $0x30] sm:$0xff]  ;;  %v289_v21 = vld [vmem:[%s704_s2 + $0x40] sm:$0xff] }
   0x8   :  { %v468_v20 = vld [vmem:[%s703_s0 + $0x10] sm:$0xff]  ;;  %v288_v22 = vld [vmem:[%s704_s2 + $0x38] sm:$0xff]  ;;  %v286_v24 = vld [vmem:[%s704_s2 + $0x28] sm:$0xff] }
   0x9   :  { %303 = vmatpush.msra.mxu1 %v294_v14  ;;  %539 = vmatpush.msra.mxu3 %v294_v14  ;;  %v287_v23 = vld [vmem:[%s704_s2 + $0x30] sm:$0xff]  ;;  %v285_v25 = vld [vmem:[%s704_s2 + $0x20] sm:$0xff]  ;;  %v284_v26 = vld [vmem:[%s704_s2 + $0x18] sm:$0xff] }
   0xa   :  { %531 = vmatpush.bf16.msra.mxu2 %v479_v2  ;;  %183 = vmatpush.bf16.msra.mxu0 %v479_v2  ;;  %v283_v27 = vld [vmem:[%s704_s2 + $0x10] sm:$0xff]  ;;  %v282_v28 = vld [vmem:[%s704_s2 + $0x8] sm:$0xff]  ;;  %v473_v29 = vld [vmem:[%s703_s0 + $0x38] sm:$0xff] }
   0xb   :  { %304 = vmatpush.msra.mxu1 %v293_v15  ;;  %540 = vmatpush.msra.mxu3 %v293_v15  ;;  %v469_v30 = vld [vmem:[%s703_s0 + $0x18] sm:$0xff]  ;;  %v281_v31 = vld [vmem:[%s704_s2] sm:$0xff] }
   0xc   :  { %v553_v49 = vld [vmem:[%s705_s3] ss:$0 sm:$0xff] }
   0xd   :  { %305 = vmatpush.msra.mxu1 %v292_v16  ;;  %541 = vmatpush.msra.mxu3 %v292_v16 }
   0xe   :  { %532 = vmatpush.bf16.msra.mxu2 %v478_v3  ;;  %184 = vmatpush.bf16.msra.mxu0 %v478_v3 }
   0xf   :  { %306 = vmatpush.msra.mxu1 %v291_v17  ;;  %542 = vmatpush.msra.mxu3 %v291_v17 }
  0x11   :  { %307 = vmatpush.msra.mxu1 %v290_v18  ;;  %543 = vmatpush.msra.mxu3 %v290_v18 }
  0x12   :  { %533 = vmatpush.bf16.msra.mxu2 %v477_v4  ;;  %185 = vmatpush.bf16.msra.mxu0 %v477_v4 }
  0x13   :  { %308 = vmatpush.msra.mxu1 %v289_v21  ;;  %544 = vmatpush.msra.mxu3 %v289_v21 }
  0x15   :  { %309 = vmatpush.msra.mxu1 %v288_v22  ;;  %545 = vmatpush.msra.mxu3 %v288_v22 }
  0x16   :  { %534 = vmatpush.bf16.msra.mxu2 %v476_v5  ;;  %186 = vmatpush.bf16.msra.mxu0 %v476_v5 }
  0x17   :  { %310 = vmatpush.msra.mxu1 %v287_v23  ;;  %546 = vmatpush.msra.mxu3 %v287_v23 }
  0x19   :  { %311 = vmatpush.msra.mxu1 %v286_v24  ;;  %547 = vmatpush.msra.mxu3 %v286_v24 }
  0x1a   :  { %535 = vmatpush.bf16.msra.mxu2 %v475_v6  ;;  %187 = vmatpush.bf16.msra.mxu0 %v475_v6 }
  0x1b   :  { %312 = vmatpush.msra.mxu1 %v285_v25  ;;  %548 = vmatpush.msra.mxu3 %v285_v25 }
  0x1d   :  { %313 = vmatpush.msra.mxu1 %v284_v26  ;;  %549 = vmatpush.msra.mxu3 %v284_v26 }
  0x1e   :  { %536 = vmatpush.bf16.msra.mxu2 %v474_v7  ;;  %188 = vmatpush.bf16.msra.mxu0 %v474_v7 }
  0x1f   :  { %314 = vmatpush.msra.mxu1 %v283_v27  ;;  %550 = vmatpush.msra.mxu3 %v283_v27 }
  0x21   :  { %209 = vmatmul.bf16.vlgmr.msra.gmra.mxu2 %v470_v8  ;;  %189 = vmatmul.bf16.vlgmr.msra.gmra.mxu0 %v466_v9 }
  0x22   :  { %315 = vmatpush.msra.mxu1 %v282_v28  ;;  %551 = vmatpush.msra.mxu3 %v282_v28 }
  0x24   :  { %316 = vmatpush.msra.mxu1 %v281_v31  ;;  %552 = vmatpush.msra.mxu3 %v281_v31 }
  0x31   :  { %214 = vmatmul.bf16.gmra.mxu2 %v471_v10  ;;  %194 = vmatmul.bf16.gmra.mxu0 %v467_v11 }
  0x41   :  { %219 = vmatmul.bf16.gmra.mxu2 %v472_v19  ;;  %199 = vmatmul.bf16.gmra.mxu0 %v468_v20 }
  0x51   :  { %224 = vmatmul.bf16.gmra.mxu2 %v473_v29  ;;  %204 = vmatmul.bf16.gmra.mxu0 %v469_v30 }
  0x9e   :  { %v190_v32 = vpop.f32.mrf.mxu0 }
  0x9f   :  { %317 = vmatmul.f32.vlgmr.msra.gmra.mxu1 %v190_v32 }
  0xa4   :  { %v210_v33 = vpop.f32.mrf.mxu2 }
  0xa5   :  { %341 = vmatmul.f32.vlgmr.msra.gmra.mxu3 %v210_v33 }
  0xa6   :  { %v192_v34 = vpop.f32.mrf.mxu0 }
  0xa7   :  { %320 = vmatmul.f32.gmra.mxu1 %v192_v34 }
  0xac   :  { %v212_v35 = vpop.f32.mrf.mxu2 }
  0xad   :  { %344 = vmatmul.f32.gmra.mxu3 %v212_v35 }
  0xae   :  { %v195_v36 = vpop.f32.mrf.mxu0 }
  0xaf   :  { %323 = vmatmul.f32.gmra.mxu1 %v195_v36 }
  0xb4   :  { %v215_v37 = vpop.f32.mrf.mxu2 }
  0xb5   :  { %347 = vmatmul.f32.gmra.mxu3 %v215_v37 }
  0xb6   :  { %v197_v38 = vpop.f32.mrf.mxu0 }
  0xb7   :  { %326 = vmatmul.f32.gmra.mxu1 %v197_v38 }
  0xbc   :  { %v217_v39 = vpop.f32.mrf.mxu2 }
  0xbd   :  { %350 = vmatmul.f32.gmra.mxu3 %v217_v39 }
  0xbe   :  { %v200_v40 = vpop.f32.mrf.mxu0 }
  0xbf   :  { %329 = vmatmul.f32.gmra.mxu1 %v200_v40 }
  0xc4   :  { %v220_v41 = vpop.f32.mrf.mxu2 }
  0xc5   :  { %353 = vmatmul.f32.gmra.mxu3 %v220_v41 }
  0xc6   :  { %v202_v42 = vpop.f32.mrf.mxu0 }
  0xc7   :  { %332 = vmatmul.f32.gmra.mxu1 %v202_v42 }
  0xcc   :  { %v222_v43 = vpop.f32.mrf.mxu2 }
  0xcd   :  { %356 = vmatmul.f32.gmra.mxu3 %v222_v43 }
  0xce   :  { %v205_v44 = vpop.f32.mrf.mxu0 }
  0xcf   :  { %335 = vmatmul.f32.gmra.mxu1 %v205_v44 }
  0xd4   :  { %v225_v45 = vpop.f32.mrf.mxu2 }
  0xd5   :  { %359 = vmatmul.f32.gmra.mxu3 %v225_v45 }
  0xd6   :  { %v207_v46 = vpop.f32.mrf.mxu0 }
  0xd7   :  { %338 = vmatmul.f32.gmra.mxu1 %v207_v46 }
  0xdc   :  { %v227_v47 = vpop.f32.mrf.mxu2 }
  0xdd   :  { %362 = vmatmul.f32.gmra.mxu3 %v227_v47 }
 0x11c   :  { %v318_v48 = vpop.f32.mrf.mxu1 }
 0x11d   :  { %v319_v50 = vadd.f32 %v553_v49, %v318_v48 }
 0x124   :  { %v321_v51 = vpop.f32.mrf.mxu1 }
 0x125   :  { %v322_v52 = vadd.f32 %v553_v49, %v321_v51 }
 0x127   :  { %v485_v53 = vpack.c.bf16 %v322_v52, %v319_v50 }
 0x128   :  { %v342_v54 = vpop.f32.mrf.mxu3 }
 0x129   :  { %486 = vst [vmem:[%s706_s4] sm:$0xff] %v485_v53   ;;  %v343_v57 = vadd.f32 %v553_v49, %v342_v54 }
 0x12c   :  { %v324_v55 = vpop.f32.mrf.mxu1 }
 0x12d   :  { %v325_v59 = vadd.f32 %v553_v49, %v324_v55 }
 0x130   :  { %v345_v56 = vpop.f32.mrf.mxu3 }
 0x131   :  { %v346_v58 = vadd.f32 %v553_v49, %v345_v56 }
 0x133   :  { %v505_v60 = vpack.c.bf16 %v346_v58, %v343_v57 }
 0x134   :  { %v327_v61 = vpop.f32.mrf.mxu1 }
 0x135   :  { %525 = vst [vmem:[%s706_s4 + $0x20] sm:$0xff] %v505_v60   ;;  %v328_v62 = vadd.f32 %v553_v49, %v327_v61 }
 0x137   :  { %v490_v63 = vpack.c.bf16 %v328_v62, %v325_v59 }
 0x138   :  { %v348_v0 = vpop.f32.mrf.mxu3 }
 0x139   :  { %522 = vst [vmem:[%s706_s4 + $0x8] sm:$0xff] %v490_v63   ;;  %v349_v3 = vadd.f32 %v553_v49, %v348_v0 }
 0x13c   :  { %v330_v1 = vpop.f32.mrf.mxu1 }
 0x13d   :  { %v331_v5 = vadd.f32 %v553_v49, %v330_v1 }
 0x140   :  { %v351_v2 = vpop.f32.mrf.mxu3 }
 0x141   :  { %v352_v4 = vadd.f32 %v553_v49, %v351_v2 }
 0x143   :  { %v510_v6 = vpack.c.bf16 %v352_v4, %v349_v3 }
 0x144   :  { %v333_v7 = vpop.f32.mrf.mxu1 }
 0x145   :  { %526 = vst [vmem:[%s706_s4 + $0x28] sm:$0xff] %v510_v6   ;;  %v334_v8 = vadd.f32 %v553_v49, %v333_v7 }
 0x147   :  { %v495_v9 = vpack.c.bf16 %v334_v8, %v331_v5 }
 0x148   :  { %v354_v10 = vpop.f32.mrf.mxu3 }
 0x149   :  { %523 = vst [vmem:[%s706_s4 + $0x10] sm:$0xff] %v495_v9   ;;  %v355_v13 = vadd.f32 %v553_v49, %v354_v10 }
 0x14c   :  { %v336_v11 = vpop.f32.mrf.mxu1 }
 0x14d   :  { %v337_v15 = vadd.f32 %v553_v49, %v336_v11 }
 0x150   :  { %v357_v12 = vpop.f32.mrf.mxu3 }
 0x151   :  { %v358_v14 = vadd.f32 %v553_v49, %v357_v12 }
 0x153   :  { %v515_v16 = vpack.c.bf16 %v358_v14, %v355_v13 }
 0x154   :  { %v339_v17 = vpop.f32.mrf.mxu1 }
 0x155   :  { %527 = vst [vmem:[%s706_s4 + $0x30] sm:$0xff] %v515_v16   ;;  %v340_v18 = vadd.f32 %v553_v49, %v339_v17 }
 0x157   :  { %v500_v19 = vpack.c.bf16 %v340_v18, %v337_v15 }
 0x158   :  { %v360_v20 = vpop.f32.mrf.mxu3 }
 0x159   :  { %524 = vst [vmem:[%s706_s4 + $0x18] sm:$0xff] %v500_v19   ;;  %v361_v22 = vadd.f32 %v553_v49, %v360_v20 }
 0x160   :  { %v363_v21 = vpop.f32.mrf.mxu3 }
 0x161   :  { %v364_v23 = vadd.f32 %v553_v49, %v363_v21 }
 0x163   :  { %v520_v24 = vpack.c.bf16 %v364_v23, %v361_v22 }
 0x165   :  { %528 = vst [vmem:[%s706_s4 + $0x38] sm:$0xff] %v520_v24  }

// kernel: gnn_forward.7
= control target key start
LH: loop header
LB: loop body
LE: loop exit
PB: predicated region body
PF: predicated region fallthrough
CT: control target
= control target key end

     0   :  { %s299_s1 = inlined_call_operand.vmem [shape: bf16[128,128], index: 1, kind: input, shape index: {}]   ;;  %s300_s2 = inlined_call_operand.vmem [shape: f32[128,128], index: 2, kind: input, shape index: {}]   ;;  %s301_s0 = inlined_call_operand.vmem [shape: bf16[8,128], index: 0, kind: input, shape index: {}]   ;;  %s302_s3 = inlined_call_operand.vmem [shape: f32[1,128], index: 3, kind: input, shape index: {}]   ;;  %s303_s4 = inlined_call_operand.vmem [shape: f32[8,128], index: 4, kind: output, shape index: {}]  }
   0x1   :  { %v191_v0 = vld [vmem:[%s299_s1 + $0x38] sm:$0xff]  ;;  %v190_v1 = vld [vmem:[%s299_s1 + $0x30] sm:$0xff]  ;;  %v120_v4 = vld [vmem:[%s300_s2 + $0x68] sm:$0xff] }
   0x2   :  { %88 = vmatpush.bf16.msra.mxu0 %v191_v0  ;;  %v122_v2 = vld [vmem:[%s300_s2 + $0x78] sm:$0xff]  ;;  %v121_v3 = vld [vmem:[%s300_s2 + $0x70] sm:$0xff]  ;;  %v189_v5 = vld [vmem:[%s299_s1 + $0x28] sm:$0xff] }
   0x3   :  { %127 = vmatpush.msra.mxu1 %v122_v2  ;;  %v119_v6 = vld [vmem:[%s300_s2 + $0x60] sm:$0xff]  ;;  %v118_v7 = vld [vmem:[%s300_s2 + $0x58] sm:$0xff]  ;;  %v117_v9 = vld [vmem:[%s300_s2 + $0x50] sm:$0xff] }
   0x4   :  { %v188_v8 = vld [vmem:[%s299_s1 + $0x20] sm:$0xff]  ;;  %v116_v10 = vld [vmem:[%s300_s2 + $0x48] sm:$0xff]  ;;  %v187_v11 = vld [vmem:[%s299_s1 + $0x18] sm:$0xff] }
   0x5   :  { %128 = vmatpush.msra.mxu1 %v121_v3  ;;  %v115_v12 = vld [vmem:[%s300_s2 + $0x40] sm:$0xff]  ;;  %v114_v13 = vld [vmem:[%s300_s2 + $0x38] sm:$0xff]  ;;  %v186_v14 = vld [vmem:[%s299_s1 + $0x10] sm:$0xff] }
   0x6   :  { %89 = vmatpush.bf16.msra.mxu0 %v190_v1  ;;  %v113_v15 = vld [vmem:[%s300_s2 + $0x30] sm:$0xff]  ;;  %v112_v16 = vld [vmem:[%s300_s2 + $0x28] sm:$0xff]  ;;  %v111_v18 = vld [vmem:[%s300_s2 + $0x20] sm:$0xff] }
   0x7   :  { %129 = vmatpush.msra.mxu1 %v120_v4  ;;  %v185_v17 = vld [vmem:[%s299_s1 + $0x8] sm:$0xff]  ;;  %v110_v19 = vld [vmem:[%s300_s2 + $0x18] sm:$0xff]  ;;  %v184_v20 = vld [vmem:[%s299_s1] sm:$0xff] }
   0x8   :  { %v109_v21 = vld [vmem:[%s300_s2 + $0x10] sm:$0xff]  ;;  %v108_v22 = vld [vmem:[%s300_s2 + $0x8] sm:$0xff]  ;;  %v23_v23 = vld [vmem:[%s301_s0] sm:$0xf] }
   0x9   :  { %130 = vmatpush.msra.mxu1 %v119_v6  ;;  %v107_v24 = vld [vmem:[%s300_s2] sm:$0xff] }
   0xa   :  { %90 = vmatpush.bf16.msra.mxu0 %v189_v5  ;;  %v192_v27 = vld [vmem:[%s302_s3] ss:$0 sm:$0xff] }
   0xb   :  { %131 = vmatpush.msra.mxu1 %v118_v7 }
   0xd   :  { %132 = vmatpush.msra.mxu1 %v117_v9 }
   0xe   :  { %91 = vmatpush.bf16.msra.mxu0 %v188_v8 }
   0xf   :  { %133 = vmatpush.msra.mxu1 %v116_v10 }
  0x11   :  { %134 = vmatpush.msra.mxu1 %v115_v12 }
  0x12   :  { %92 = vmatpush.bf16.msra.mxu0 %v187_v11 }
  0x13   :  { %135 = vmatpush.msra.mxu1 %v114_v13 }
  0x15   :  { %136 = vmatpush.msra.mxu1 %v113_v15 }
  0x16   :  { %93 = vmatpush.bf16.msra.mxu0 %v186_v14 }
  0x17   :  { %137 = vmatpush.msra.mxu1 %v112_v16 }
  0x19   :  { %138 = vmatpush.msra.mxu1 %v111_v18 }
  0x1a   :  { %94 = vmatpush.bf16.msra.mxu0 %v185_v17 }
  0x1b   :  { %139 = vmatpush.msra.mxu1 %v110_v19 }
  0x1d   :  { %140 = vmatpush.msra.mxu1 %v109_v21 }
  0x1e   :  { %95 = vmatpush.bf16.msra.mxu0 %v184_v20 }
  0x1f   :  { %141 = vmatpush.msra.mxu1 %v108_v22 }
  0x21   :  { %96 = vmatmul.bf16.vlgmr.msra.gmra.mxu0 %v23_v23  ;;  %142 = vmatpush.msra.mxu1 %v107_v24 }
  0x9e   :  { %v97_v25 = vpop.f32.mrf.mxu0 }
  0x9f   :  { %143 = vmatmul.f32.vlgmr.msra.gmra.mxu1 %v97_v25 }
  0xa6   :  { %v99_v26 = vpop.f32.mrf.mxu0 }
 0x11c   :  { %v144_v28 = vpop.f32.mrf.mxu1 }
 0x11d   :  { %v145_v29 = vadd.f32 %v192_v27, %v144_v28 }
 0x11f   :  { %147 = vst [vmem:[%s303_s4] sm:$0xff] %v145_v29 }

// kernel: gnn_forward.4
= control target key start
LH: loop header
LB: loop body
LE: loop exit
PB: predicated region body
PF: predicated region fallthrough
CT: control target
= control target key end

     0   :  { %s718_s1 = inlined_call_operand.vmem [shape: bf16[128,128], index: 1, kind: input, shape index: {}]   ;;  %s719_s0 = inlined_call_operand.vmem [shape: bf16[128,128], index: 0, kind: input, shape index: {}]   ;;  %s720_s2 = inlined_call_operand.vmem [shape: f32[128,128], index: 2, kind: input, shape index: {}]   ;;  %s721_s3 = inlined_call_operand.vmem [shape: f32[1,128], index: 3, kind: input, shape index: {}]   ;;  %s722_s4 = inlined_call_operand.vmem [shape: bf16[128,128], index: 4, kind: output, shape index: {}]  }
   0x1   :  { %v497_v0 = vld [vmem:[%s718_s1 + $0x38] sm:$0xff]  ;;  %v496_v1 = vld [vmem:[%s718_s1 + $0x30] sm:$0xff]  ;;  %v495_v2 = vld [vmem:[%s718_s1 + $0x28] sm:$0xff] }
   0x2   :  { %545 = vmatpush.bf16.msra.mxu2 %v497_v0  ;;  %181 = vmatpush.bf16.msra.mxu0 %v497_v0  ;;  %v494_v3 = vld [vmem:[%s718_s1 + $0x20] sm:$0xff]  ;;  %v493_v4 = vld [vmem:[%s718_s1 + $0x18] sm:$0xff]  ;;  %v492_v5 = vld [vmem:[%s718_s1 + $0x10] sm:$0xff] }
   0x3   :  { %v491_v6 = vld [vmem:[%s718_s1 + $0x8] sm:$0xff]  ;;  %v490_v7 = vld [vmem:[%s718_s1] sm:$0xff]  ;;  %v296_v12 = vld [vmem:[%s720_s2 + $0x78] sm:$0xff] }
   0x4   :  { %v486_v8 = vld [vmem:[%s719_s0 + $0x20] sm:$0xff]  ;;  %v487_v10 = vld [vmem:[%s719_s0 + $0x28] sm:$0xff]  ;;  %v295_v13 = vld [vmem:[%s720_s2 + $0x70] sm:$0xff]  ;;  %301 = vmatpush.msra.mxu1 %v296_v12  ;;  %553 = vmatpush.msra.mxu3 %v296_v12 }
   0x5   :  { %v482_v9 = vld [vmem:[%s719_s0] sm:$0xff]  ;;  %v483_v11 = vld [vmem:[%s719_s0 + $0x8] sm:$0xff]  ;;  %v292_v16 = vld [vmem:[%s720_s2 + $0x58] sm:$0xff] }
   0x6   :  { %546 = vmatpush.bf16.msra.mxu2 %v496_v1  ;;  %182 = vmatpush.bf16.msra.mxu0 %v496_v1  ;;  %v294_v14 = vld [vmem:[%s720_s2 + $0x68] sm:$0xff]  ;;  %v293_v15 = vld [vmem:[%s720_s2 + $0x60] sm:$0xff]  ;;  %v291_v17 = vld [vmem:[%s720_s2 + $0x50] sm:$0xff] }
   0x7   :  { %302 = vmatpush.msra.mxu1 %v295_v13  ;;  %554 = vmatpush.msra.mxu3 %v295_v13  ;;  %v290_v18 = vld [vmem:[%s720_s2 + $0x48] sm:$0xff]  ;;  %v488_v19 = vld [vmem:[%s719_s0 + $0x30] sm:$0xff]  ;;  %v289_v21 = vld [vmem:[%s720_s2 + $0x40] sm:$0xff] }
   0x8   :  { %v484_v20 = vld [vmem:[%s719_s0 + $0x10] sm:$0xff]  ;;  %v288_v22 = vld [vmem:[%s720_s2 + $0x38] sm:$0xff]  ;;  %v286_v24 = vld [vmem:[%s720_s2 + $0x28] sm:$0xff] }
   0x9   :  { %303 = vmatpush.msra.mxu1 %v294_v14  ;;  %555 = vmatpush.msra.mxu3 %v294_v14  ;;  %v287_v23 = vld [vmem:[%s720_s2 + $0x30] sm:$0xff]  ;;  %v285_v25 = vld [vmem:[%s720_s2 + $0x20] sm:$0xff]  ;;  %v284_v26 = vld [vmem:[%s720_s2 + $0x18] sm:$0xff] }
   0xa   :  { %547 = vmatpush.bf16.msra.mxu2 %v495_v2  ;;  %183 = vmatpush.bf16.msra.mxu0 %v495_v2  ;;  %v283_v27 = vld [vmem:[%s720_s2 + $0x10] sm:$0xff]  ;;  %v282_v28 = vld [vmem:[%s720_s2 + $0x8] sm:$0xff]  ;;  %v489_v29 = vld [vmem:[%s719_s0 + $0x38] sm:$0xff] }
   0xb   :  { %304 = vmatpush.msra.mxu1 %v293_v15  ;;  %556 = vmatpush.msra.mxu3 %v293_v15  ;;  %v485_v30 = vld [vmem:[%s719_s0 + $0x18] sm:$0xff]  ;;  %v281_v31 = vld [vmem:[%s720_s2] sm:$0xff] }
   0xc   :  { %v569_v49 = vld [vmem:[%s721_s3] ss:$0 sm:$0xff] }
   0xd   :  { %305 = vmatpush.msra.mxu1 %v292_v16  ;;  %557 = vmatpush.msra.mxu3 %v292_v16 }
   0xe   :  { %548 = vmatpush.bf16.msra.mxu2 %v494_v3  ;;  %184 = vmatpush.bf16.msra.mxu0 %v494_v3 }
   0xf   :  { %306 = vmatpush.msra.mxu1 %v291_v17  ;;  %558 = vmatpush.msra.mxu3 %v291_v17 }
  0x11   :  { %307 = vmatpush.msra.mxu1 %v290_v18  ;;  %559 = vmatpush.msra.mxu3 %v290_v18 }
  0x12   :  { %549 = vmatpush.bf16.msra.mxu2 %v493_v4  ;;  %185 = vmatpush.bf16.msra.mxu0 %v493_v4 }
  0x13   :  { %308 = vmatpush.msra.mxu1 %v289_v21  ;;  %560 = vmatpush.msra.mxu3 %v289_v21 }
  0x15   :  { %309 = vmatpush.msra.mxu1 %v288_v22  ;;  %561 = vmatpush.msra.mxu3 %v288_v22 }
  0x16   :  { %550 = vmatpush.bf16.msra.mxu2 %v492_v5  ;;  %186 = vmatpush.bf16.msra.mxu0 %v492_v5 }
  0x17   :  { %310 = vmatpush.msra.mxu1 %v287_v23  ;;  %562 = vmatpush.msra.mxu3 %v287_v23 }
  0x19   :  { %311 = vmatpush.msra.mxu1 %v286_v24  ;;  %563 = vmatpush.msra.mxu3 %v286_v24 }
  0x1a   :  { %551 = vmatpush.bf16.msra.mxu2 %v491_v6  ;;  %187 = vmatpush.bf16.msra.mxu0 %v491_v6 }
  0x1b   :  { %312 = vmatpush.msra.mxu1 %v285_v25  ;;  %564 = vmatpush.msra.mxu3 %v285_v25 }
  0x1d   :  { %313 = vmatpush.msra.mxu1 %v284_v26  ;;  %565 = vmatpush.msra.mxu3 %v284_v26 }
  0x1e   :  { %552 = vmatpush.bf16.msra.mxu2 %v490_v7  ;;  %188 = vmatpush.bf16.msra.mxu0 %v490_v7 }
  0x1f   :  { %314 = vmatpush.msra.mxu1 %v283_v27  ;;  %566 = vmatpush.msra.mxu3 %v283_v27 }
  0x21   :  { %209 = vmatmul.bf16.vlgmr.msra.gmra.mxu2 %v486_v8  ;;  %189 = vmatmul.bf16.vlgmr.msra.gmra.mxu0 %v482_v9 }
  0x22   :  { %315 = vmatpush.msra.mxu1 %v282_v28  ;;  %567 = vmatpush.msra.mxu3 %v282_v28 }
  0x24   :  { %316 = vmatpush.msra.mxu1 %v281_v31  ;;  %568 = vmatpush.msra.mxu3 %v281_v31 }
  0x31   :  { %214 = vmatmul.bf16.gmra.mxu2 %v487_v10  ;;  %194 = vmatmul.bf16.gmra.mxu0 %v483_v11 }
  0x41   :  { %219 = vmatmul.bf16.gmra.mxu2 %v488_v19  ;;  %199 = vmatmul.bf16.gmra.mxu0 %v484_v20 }
  0x51   :  { %224 = vmatmul.bf16.gmra.mxu2 %v489_v29  ;;  %204 = vmatmul.bf16.gmra.mxu0 %v485_v30 }
  0x9e   :  { %v190_v32 = vpop.f32.mrf.mxu0 }
  0x9f   :  { %317 = vmatmul.f32.vlgmr.msra.gmra.mxu1 %v190_v32 }
  0xa4   :  { %v210_v33 = vpop.f32.mrf.mxu2 }
  0xa5   :  { %341 = vmatmul.f32.vlgmr.msra.gmra.mxu3 %v210_v33 }
  0xa6   :  { %v192_v34 = vpop.f32.mrf.mxu0 }
  0xa7   :  { %320 = vmatmul.f32.gmra.mxu1 %v192_v34 }
  0xac   :  { %v212_v35 = vpop.f32.mrf.mxu2 }
  0xad   :  { %344 = vmatmul.f32.gmra.mxu3 %v212_v35 }
  0xae   :  { %v195_v36 = vpop.f32.mrf.mxu0 }
  0xaf   :  { %323 = vmatmul.f32.gmra.mxu1 %v195_v36 }
  0xb4   :  { %v215_v37 = vpop.f32.mrf.mxu2 }
  0xb5   :  { %347 = vmatmul.f32.gmra.mxu3 %v215_v37 }
  0xb6   :  { %v197_v38 = vpop.f32.mrf.mxu0 }
  0xb7   :  { %326 = vmatmul.f32.gmra.mxu1 %v197_v38 }
  0xbc   :  { %v217_v39 = vpop.f32.mrf.mxu2 }
  0xbd   :  { %350 = vmatmul.f32.gmra.mxu3 %v217_v39 }
  0xbe   :  { %v200_v40 = vpop.f32.mrf.mxu0 }
  0xbf   :  { %329 = vmatmul.f32.gmra.mxu1 %v200_v40 }
  0xc4   :  { %v220_v41 = vpop.f32.mrf.mxu2 }
  0xc5   :  { %353 = vmatmul.f32.gmra.mxu3 %v220_v41 }
  0xc6   :  { %v202_v42 = vpop.f32.mrf.mxu0 }
  0xc7   :  { %332 = vmatmul.f32.gmra.mxu1 %v202_v42 }
  0xcc   :  { %v222_v43 = vpop.f32.mrf.mxu2 }
  0xcd   :  { %356 = vmatmul.f32.gmra.mxu3 %v222_v43 }
  0xce   :  { %v205_v44 = vpop.f32.mrf.mxu0 }
  0xcf   :  { %335 = vmatmul.f32.gmra.mxu1 %v205_v44 }
  0xd4   :  { %v225_v45 = vpop.f32.mrf.mxu2 }
  0xd5   :  { %359 = vmatmul.f32.gmra.mxu3 %v225_v45 }
  0xd6   :  { %v207_v46 = vpop.f32.mrf.mxu0 }
  0xd7   :  { %338 = vmatmul.f32.gmra.mxu1 %v207_v46 }
  0xdc   :  { %v227_v47 = vpop.f32.mrf.mxu2 }
  0xdd   :  { %362 = vmatmul.f32.gmra.mxu3 %v227_v47 }
 0x11c   :  { %v318_v48 = vpop.f32.mrf.mxu1 }
 0x11d   :  { %v319_v50 = vadd.f32 %v569_v49, %v318_v48 }
 0x11f   :  { %v366_v52 = vmax.f32 %v319_v50, 0.0 }
 0x124   :  { %v321_v51 = vpop.f32.mrf.mxu1 }
 0x125   :  { %v322_v53 = vadd.f32 %v569_v49, %v321_v51 }
 0x127   :  { %v367_v54 = vmax.f32 %v322_v53, 0.0 }
 0x128   :  { %v342_v55 = vpop.f32.mrf.mxu3 }
 0x129   :  { %v501_v56 = vpack.c.bf16 %v367_v54, %v366_v52  ;;  %v343_v58 = vadd.f32 %v569_v49, %v342_v55 }
 0x12b   :  { %502 = vst [vmem:[%s722_s4] sm:$0xff] %v501_v56   ;;  %v374_v62 = vmax.f32 %v343_v58, 0.0 }
 0x12c   :  { %v324_v57 = vpop.f32.mrf.mxu1 }
 0x12d   :  { %v325_v60 = vadd.f32 %v569_v49, %v324_v57 }
 0x12f   :  { %v368_v1 = vmax.f32 %v325_v60, 0.0 }
 0x130   :  { %v345_v59 = vpop.f32.mrf.mxu3 }
 0x131   :  { %v346_v61 = vadd.f32 %v569_v49, %v345_v59 }
 0x133   :  { %v375_v63 = vmax.f32 %v346_v61, 0.0 }
 0x134   :  { %v327_v0 = vpop.f32.mrf.mxu1 }
 0x135   :  { %v521_v2 = vpack.c.bf16 %v375_v63, %v374_v62  ;;  %v328_v3 = vadd.f32 %v569_v49, %v327_v0 }
 0x137   :  { %541 = vst [vmem:[%s722_s4 + $0x20] sm:$0xff] %v521_v2   ;;  %v369_v4 = vmax.f32 %v328_v3, 0.0 }
 0x138   :  { %v348_v5 = vpop.f32.mrf.mxu3 }
 0x139   :  { %v506_v6 = vpack.c.bf16 %v369_v4, %v368_v1  ;;  %v349_v8 = vadd.f32 %v569_v49, %v348_v5 }
 0x13b   :  { %538 = vst [vmem:[%s722_s4 + $0x8] sm:$0xff] %v506_v6   ;;  %v376_v12 = vmax.f32 %v349_v8, 0.0 }
 0x13c   :  { %v330_v7 = vpop.f32.mrf.mxu1 }
 0x13d   :  { %v331_v10 = vadd.f32 %v569_v49, %v330_v7 }
 0x13f   :  { %v370_v15 = vmax.f32 %v331_v10, 0.0 }
 0x140   :  { %v351_v9 = vpop.f32.mrf.mxu3 }
 0x141   :  { %v352_v11 = vadd.f32 %v569_v49, %v351_v9 }
 0x143   :  { %v377_v13 = vmax.f32 %v352_v11, 0.0 }
 0x144   :  { %v333_v14 = vpop.f32.mrf.mxu1 }
 0x145   :  { %v526_v16 = vpack.c.bf16 %v377_v13, %v376_v12  ;;  %v334_v17 = vadd.f32 %v569_v49, %v333_v14 }
 0x147   :  { %542 = vst [vmem:[%s722_s4 + $0x28] sm:$0xff] %v526_v16   ;;  %v371_v18 = vmax.f32 %v334_v17, 0.0 }
 0x148   :  { %v354_v19 = vpop.f32.mrf.mxu3 }
 0x149   :  { %v511_v20 = vpack.c.bf16 %v371_v18, %v370_v15  ;;  %v355_v22 = vadd.f32 %v569_v49, %v354_v19 }
 0x14b   :  { %539 = vst [vmem:[%s722_s4 + $0x10] sm:$0xff] %v511_v20   ;;  %v378_v26 = vmax.f32 %v355_v22, 0.0 }
 0x14c   :  { %v336_v21 = vpop.f32.mrf.mxu1 }
 0x14d   :  { %v337_v24 = vadd.f32 %v569_v49, %v336_v21 }
 0x14f   :  { %v372_v29 = vmax.f32 %v337_v24, 0.0 }
 0x150   :  { %v357_v23 = vpop.f32.mrf.mxu3 }
 0x151   :  { %v358_v25 = vadd.f32 %v569_v49, %v357_v23 }
 0x153   :  { %v379_v27 = vmax.f32 %v358_v25, 0.0 }
 0x154   :  { %v339_v28 = vpop.f32.mrf.mxu1 }
 0x155   :  { %v531_v30 = vpack.c.bf16 %v379_v27, %v378_v26  ;;  %v340_v31 = vadd.f32 %v569_v49, %v339_v28 }
 0x157   :  { %543 = vst [vmem:[%s722_s4 + $0x30] sm:$0xff] %v531_v30   ;;  %v373_v32 = vmax.f32 %v340_v31, 0.0 }
 0x158   :  { %v360_v33 = vpop.f32.mrf.mxu3 }
 0x159   :  { %v516_v34 = vpack.c.bf16 %v373_v32, %v372_v29  ;;  %v361_v35 = vadd.f32 %v569_v49, %v360_v33 }
 0x15b   :  { %540 = vst [vmem:[%s722_s4 + $0x18] sm:$0xff] %v516_v34   ;;  %v380_v38 = vmax.f32 %v361_v35, 0.0 }
 0x160   :  { %v363_v36 = vpop.f32.mrf.mxu3 }
 0x161   :  { %v364_v37 = vadd.f32 %v569_v49, %v363_v36 }
 0x163   :  { %v381_v39 = vmax.f32 %v364_v37, 0.0 }
 0x165   :  { %v536_v40 = vpack.c.bf16 %v381_v39, %v380_v38 }
 0x167   :  { %544 = vst [vmem:[%s722_s4 + $0x38] sm:$0xff] %v536_v40  }

</bundles_post_ra>
